<compile_context>
chip_gen: v6e
topology: v6e:2x2x1
jax: 0.10.0
libtpu: 0.0.40
codegen_flags: <defaults>
</compile_context>

<pallas_src>
import math
import functools

import jax
import jax.numpy as jnp
from jax.experimental import pallas as pl
from jax.experimental.pallas import tpu as pltpu


# ---------------------------------------------------------------------------
# helpers
# ---------------------------------------------------------------------------
def _round_up(x, m):
    return ((x + m - 1) // m) * m


def _vmem_capacity_bytes():
    """Per-generation VMEM capacity; conservative fallback if query fails."""
    try:
        return int(pltpu.get_tpu_info().vmem_capacity_bytes)
    except Exception:
        return 64 * 1024 * 1024          # v7x-sized conservative default


def _pad_axis(x, axis, target):
    pad = target - x.shape[axis]
    if pad <= 0:
        return x
    widths = [(0, 0)] * x.ndim
    widths[axis] = (0, pad)
    return jnp.pad(x, widths)


def _pick_tq(t_pad, max_tq=256):
    """Largest query tile (multiple of 8, <= max_tq) that divides t_pad."""
    if t_pad <= max_tq:
        return t_pad
    for cand in range(max_tq, 7, -8):
        if t_pad % cand == 0:
            return cand
    return 8


def _pick_block_b(B, t_pad, tq, D, dkp, cb, ab, budget):
    """Largest batch block whose working set fits the VMEM budget."""
    per_b = (
        2 * 4 * (tq * D + 2 * t_pad * D)            # dbl-buffered q/k/v in-blocks (f32)
        + 2 * (4 * tq * D + ab * tq * t_pad)        # dbl-buffered out/attn out-blocks
        + 2 * cb * t_pad * dkp                      # kh / vh VMEM scratch
        + cb * (2 * t_pad * D + tq * D)             # operand casts of k2/v2/q2
        + 4 * (3 * tq * t_pad + 2 * tq * dkp + tq * D)   # scores/e/attn, qh/head, out
    )
    per_b = int(per_b * 1.25)                       # ~25% headroom (relayouts, bcasts)
    w_bytes = 2 * cb * 4 * D * dkp                  # dbl-buffered wq/wk/wv/wo
    avail = max(budget - w_bytes, per_b)
    return max(1, min(B, avail // per_b))


# ---------------------------------------------------------------------------
# kernel
# ---------------------------------------------------------------------------
def _imha_kernel(q_ref, k_ref, v_ref, wq_ref, wk_ref, wv_ref, wo_ref,
                 out_ref, attn_ref, kh_ref, vh_ref,
                 *, t_valid, scale, compute_dtype):
    bb, tq, D = q_ref.shape
    Tp = k_ref.shape[1]
    dkp = wq_ref.shape[1]
    cdt = compute_dtype

    # ---- K/V projections: query-tile invariant -> compute once per batch
    # block (first query-tile step) and keep resident in VMEM scratch. ----
    @pl.when(pl.program_id(1) == 0)
    def _():
        k2 = k_ref[...].reshape(bb * Tp, D).astype(cdt)
        v2 = v_ref[...].reshape(bb * Tp, D).astype(cdt)
        kh = jnp.dot(k2, wk_ref[...].astype(cdt),
                     preferred_element_type=jnp.float32)
        vh = jnp.dot(v2, wv_ref[...].astype(cdt),
                     preferred_element_type=jnp.float32)
        kh_ref[...] = kh.reshape(bb, Tp, dkp).astype(kh_ref.dtype)
        vh_ref[...] = vh.reshape(bb, Tp, dkp).astype(vh_ref.dtype)

    # ---- Q projection; 1/sqrt(d_k) folded into the small (tq, dkp) tile ----
    q2 = q_ref[...].reshape(bb * tq, D).astype(cdt)
    qh = jnp.dot(q2, wq_ref[...].astype(cdt),
                 preferred_element_type=jnp.float32) * scale
    qh = qh.reshape(bb, tq, dkp)

    # ---- scaled dot-product attention (softmax in f32) ----
    scores = jnp.einsum('btk,bsk->bts', qh.astype(cdt), kh_ref[...],
                        preferred_element_type=jnp.float32)      # (bb, tq, Tp)
    if Tp > t_valid:  # static: mask zero-padded key positions
        key_idx = jax.lax.broadcasted_iota(jnp.int32, (1, 1, Tp), 2)
        scores = jnp.where(key_idx < t_valid, scores, -1e30)

    m = jnp.max(scores, axis=-1, keepdims=True)
    e = jnp.exp(scores - m)
    denom = jnp.sum(e, axis=-1, keepdims=True)
    attn = e * pl.reciprocal(denom, approx=False)                # (bb, tq, Tp) f32

    head = jnp.einsum('bts,bsk->btk', attn.astype(cdt), vh_ref[...],
                      preferred_element_type=jnp.float32)        # (bb, tq, dkp)

    # ---- output projection (heads identical -> mean over heads == head) ----
    out = jnp.dot(head.reshape(bb * tq, dkp).astype(cdt),
                  wo_ref[...].astype(cdt),
                  preferred_element_type=jnp.float32)            # (bb*tq, D)

    out_ref[...] = out.reshape(bb, tq, D).astype(out_ref.dtype)
    attn_ref[...] = attn.astype(attn_ref.dtype)


# ---------------------------------------------------------------------------
# wrapper
# ---------------------------------------------------------------------------
def interpretable_mha(q, k, v, wq, wk, wv, wo, *, n_head,
                      use_bf16=True, attn_dtype=jnp.float32,
                      block_b=None, tq=None, vmem_budget_bytes=None):
    """q, k, v: (B, T, d_model); wq/wk/wv: (d_model, d_k); wo: (d_k, d_model).

    Returns (outputs (B, T, d_model), attention weights (n_head, B, T, T)).
    """
    B, T, D = q.shape
    assert k.shape == (B, T, D) and v.shape == (B, T, D)
    assert D % n_head == 0
    d_k = D // n_head
    assert wq.shape == (D, d_k) and wk.shape == (D, d_k) and wv.shape == (D, d_k)
    assert wo.shape == (d_k, D)

    compute_dtype = jnp.bfloat16 if use_bf16 else jnp.float32
    cb = 2 if use_bf16 else 4
    ab = jnp.dtype(attn_dtype).itemsize

    # ---- padding (numerically exact; padded keys masked in-kernel) ----
    Tp = _round_up(T, 8)          # sublane-aligned time axis
    dkp = _round_up(d_k, 128)     # lane-aligned head dim (zero-pad -> exact)

    # ---- generation-aware VMEM budget / limit ----
    cap = _vmem_capacity_bytes()
    if vmem_budget_bytes is None:
        vmem_budget_bytes = min(int(cap * 0.35), 44 << 20)
    vmem_limit = max(int(vmem_budget_bytes) + (16 << 20),
                     min(int(cap * 0.75), 96 << 20))

    if tq is None:
        tq = _pick_tq(Tp)
    tq = int(tq)
    assert Tp % tq == 0 and (tq % 8 == 0 or tq == Tp)

    if block_b is None:
        block_b = _pick_block_b(B, Tp, tq, D, dkp, cb, ab, vmem_budget_bytes)
    block_b = int(max(1, min(block_b, B)))
    # Keep >= 2 steps on the parallel batch axis so v7x's 2nd TensorCore works.
    if B >= 2:
        block_b = min(block_b, pl.cdiv(B, 2))

    nb = pl.cdiv(B, block_b)
    Bp = nb * block_b
    nt = Tp // tq

    # Zero padding: padded batch rows / time steps / head columns are exact
    # (padded keys are masked before softmax inside the kernel).
    qp = _pad_axis(_pad_axis(q, 1, Tp), 0, Bp)
    kp = _pad_axis(_pad_axis(k, 1, Tp), 0, Bp)
    vp = _pad_axis(_pad_axis(v, 1, Tp), 0, Bp)
    wqp = _pad_axis(wq, 1, dkp)
    wkp = _pad_axis(wk, 1, dkp)
    wvp = _pad_axis(wv, 1, dkp)
    wop = _pad_axis(wo, 0, dkp)
    if use_bf16:
        wqp, wkp, wvp, wop = (w.astype(jnp.bfloat16)
                              for w in (wqp, wkp, wvp, wop))

    kernel = functools.partial(
        _imha_kernel,
        t_valid=T,
        scale=1.0 / math.sqrt(d_k),   # module uses the *unpadded* d_k
        compute_dtype=compute_dtype)

    grid_spec = pltpu.PrefetchScalarGridSpec(
        num_scalar_prefetch=0,
        grid=(nb, nt),
        in_specs=[
            pl.BlockSpec((block_b, tq, D), lambda b, t: (b, t, 0)),   # q (tiled)
            pl.BlockSpec((block_b, Tp, D), lambda b, t: (b, 0, 0)),   # k (full T)
            pl.BlockSpec((block_b, Tp, D), lambda b, t: (b, 0, 0)),   # v (full T)
            pl.BlockSpec((D, dkp), lambda b, t: (0, 0)),              # wq
            pl.BlockSpec((D, dkp), lambda b, t: (0, 0)),              # wk
            pl.BlockSpec((D, dkp), lambda b, t: (0, 0)),              # wv
            pl.BlockSpec((dkp, D), lambda b, t: (0, 0)),              # wo
        ],
        out_specs=[
            pl.BlockSpec((block_b, tq, D), lambda b, t: (b, t, 0)),   # outputs
            pl.BlockSpec((block_b, tq, Tp), lambda b, t: (b, t, 0)),  # attention
        ],
        scratch_shapes=[
            pltpu.VMEM((block_b, Tp, dkp), compute_dtype),  # kh cache
            pltpu.VMEM((block_b, Tp, dkp), compute_dtype),  # vh cache
        ],
    )

    out_p, attn_p = pl.pallas_call(
        kernel,
        grid_spec=grid_spec,
        out_shape=(
            jax.ShapeDtypeStruct((Bp, Tp, D), q.dtype),
            jax.ShapeDtypeStruct((Bp, Tp, Tp), attn_dtype),
        ),
        compiler_params=pltpu.CompilerParams(
            dimension_semantics=("parallel", "arbitrary"),
            vmem_limit_bytes=int(vmem_limit)),
    )(qp, kp, vp, wqp, wkp, wvp, wop)

    out = out_p[:B, :T, :]
    attn1 = attn_p[:B, :T, :T]
    # All heads share the same projection weights in this module -> identical
    # attention maps: broadcast in the wrapper instead of writing n_head copies.
    attn = jnp.broadcast_to(attn1[None], (n_head, B, T, T))
    return out, attn


# ---------------------------------------------------------------------------
# pure-JAX reference (mirrors the PyTorch forward, eval mode, mask=None)
# ---------------------------------------------------------------------------
def _reference(q, k, v, wq, wk, wv, wo, *, n_head):
    d_k = wq.shape[1]
    heads, attns = [], []
    for _ in range(n_head):
        qs = q @ wq
        ks = k @ wk
        vs = v @ wv
        scores = jnp.einsum("btd,bsd->bts", qs, ks) / math.sqrt(d_k)
        attn = jax.nn.softmax(scores, axis=-1)
        head = jnp.einsum("bts,bsd->btd", attn, vs)
        heads.append(head)
        attns.append(attn)
    head = jnp.stack(heads)            # (n_head, B, T, d_v)
    attn = jnp.stack(attns)            # (n_head, B, T, T)
    outputs = jnp.mean(head, axis=0) @ wo
    return outputs, attn


if __name__ == "__main__":
    # small TFT-like shapes
    n_head = 4
    d_model = 32
    T = 8
    B = 2
    d_k = d_model // n_head

    key = jax.random.PRNGKey(0)
    kq, kk, kv, kwq, kwk, kwv, kwo = jax.random.split(key, 7)

    q = jax.random.normal(kq, (B, T, d_model), dtype=jnp.float32)
    k = jax.random.normal(kk, (B, T, d_model), dtype=jnp.float32)
    v = jax.random.normal(kv, (B, T, d_model), dtype=jnp.float32)

    # nn.Linear(d_model, d_k, bias=False) -> weight (d_k, d_model); we store the
    # transpose (d_model, d_k).  Deterministic init ~ U(-1/sqrt(fan_in), +).
    def linear_w(rng, fan_in, fan_out):
        bound = 1.0 / math.sqrt(fan_in)
        return jax.random.uniform(rng, (fan_in, fan_out), jnp.float32,
                                  minval=-bound, maxval=bound)

    wq = linear_w(kwq, d_model, d_k)
    wk = linear_w(kwk, d_model, d_k)
    wv = linear_w(kwv, d_model, d_k)
    wo = linear_w(kwo, d_k, d_model)

    ref_out, ref_attn = _reference(q, k, v, wq, wk, wv, wo, n_head=n_head)

    # exact-precision path (f32 MXU operands, tight tolerance)
    out32, attn32 = interpretable_mha(q, k, v, wq, wk, wv, wo,
                                      n_head=n_head, use_bf16=False)
    out32 = jax.block_until_ready(out32)
    attn32 = jax.block_until_ready(attn32)
    assert out32.shape == (B, T, d_model)
    assert attn32.shape == (n_head, B, T, T)
    assert jnp.allclose(out32, ref_out, atol=1e-5, rtol=1e-5)
    assert jnp.allclose(attn32, ref_attn, atol=1e-5, rtol=1e-5)

    # default fast path: bf16 MXU operands, f32 accumulation & softmax
    out16, attn16 = interpretable_mha(q, k, v, wq, wk, wv, wo, n_head=n_head)
    out16 = jax.block_until_ready(out16)
    attn16 = jax.block_until_ready(attn16)
    assert out16.shape == (B, T, d_model)
    assert attn16.shape == (n_head, B, T, T)
    assert jnp.allclose(out16, ref_out, atol=3e-2, rtol=3e-2)
    assert jnp.allclose(attn16, ref_attn, atol=3e-2, rtol=3e-2)

    print("KERNEL_OK")
</pallas_src>

<mosaic_0001>
module attributes {stable_mosaic.version = 11 : i64} {
  func.func @_imha_kernel(%arg0: i32, %arg1: i32, %arg2: memref<1x8x32xf32, #tpu.memory_space<vmem>>, %arg3: memref<1x8x32xf32, #tpu.memory_space<vmem>>, %arg4: memref<1x8x32xf32, #tpu.memory_space<vmem>>, %arg5: memref<32x128xf32, #tpu.memory_space<vmem>>, %arg6: memref<32x128xf32, #tpu.memory_space<vmem>>, %arg7: memref<32x128xf32, #tpu.memory_space<vmem>>, %arg8: memref<128x32xf32, #tpu.memory_space<vmem>>, %arg9: memref<1x8x32xf32, #tpu.memory_space<vmem>>, %arg10: memref<1x8x8xf32, #tpu.memory_space<vmem>>, %arg11: memref<1x8x128xf32, #tpu.memory_space<vmem>>, %arg12: memref<1x8x128xf32, #tpu.memory_space<vmem>>) attributes {dimension_semantics = [#tpu.dimension_semantics<parallel>, #tpu.dimension_semantics<arbitrary>], iteration_bounds = array<i64: 2, 1>, scalar_prefetch = 0 : i64, scratch_operands = 2 : i64, tpu.core_type = #tpu.core_type<tc>, window_params = [{transform_indices = @transform_0, window_bounds = array<i64: 1, 8, 32>}, {transform_indices = @transform_1, window_bounds = array<i64: 1, 8, 32>}, {transform_indices = @transform_2, window_bounds = array<i64: 1, 8, 32>}, {pipeline_mode = #tpu.pipeline_mode<synchronous>, transform_indices = @transform_3, window_bounds = array<i64: 32, 128>}, {pipeline_mode = #tpu.pipeline_mode<synchronous>, transform_indices = @transform_4, window_bounds = array<i64: 32, 128>}, {pipeline_mode = #tpu.pipeline_mode<synchronous>, transform_indices = @transform_5, window_bounds = array<i64: 32, 128>}, {pipeline_mode = #tpu.pipeline_mode<synchronous>, transform_indices = @transform_6, window_bounds = array<i64: 128, 32>}, {transform_indices = @transform_7, window_bounds = array<i64: 1, 8, 32>}, {transform_indices = @transform_8, window_bounds = array<i64: 1, 8, 8>}]} {
    %c0_i32 = arith.constant 0 : i32
    %0 = arith.cmpi eq, %arg1, %c0_i32 : i32
    %1 = arith.extui %0 : i1 to i32
    %c0_i32_0 = arith.constant 0 : i32
    %2 = arith.cmpi ne, %1, %c0_i32_0 : i32
    scf.if %2 {
      %c0_25 = arith.constant 0 : index
      %c0_26 = arith.constant 0 : index
      %c0_27 = arith.constant 0 : index
      %30 = vector.load %arg3[%c0_25, %c0_26, %c0_27] : memref<1x8x32xf32, #tpu.memory_space<vmem>>, vector<1x8x32xf32>
      %31 = vector.shape_cast %30 : vector<1x8x32xf32> to vector<8x32xf32>
      %c0_28 = arith.constant 0 : index
      %c0_29 = arith.constant 0 : index
      %c0_30 = arith.constant 0 : index
      %32 = vector.load %arg4[%c0_28, %c0_29, %c0_30] : memref<1x8x32xf32, #tpu.memory_space<vmem>>, vector<1x8x32xf32>
      %33 = vector.shape_cast %32 : vector<1x8x32xf32> to vector<8x32xf32>
      %c0_31 = arith.constant 0 : index
      %c0_32 = arith.constant 0 : index
      %34 = vector.load %arg6[%c0_31, %c0_32] : memref<32x128xf32, #tpu.memory_space<vmem>>, vector<32x128xf32>
      %cst_33 = arith.constant dense<0.000000e+00> : vector<8x128xf32>
      %35 = tpu.matmul %31, %34, %cst_33 {dimension_numbers = #tpu.dot_dimension_numbers<[1], [0], [0], [1], [0, 0, 1, 1], [], []>} : vector<8x32xf32>, vector<32x128xf32>, vector<8x128xf32> -> vector<8x128xf32>
      %c0_34 = arith.constant 0 : index
      %c0_35 = arith.constant 0 : index
      %36 = vector.load %arg7[%c0_34, %c0_35] : memref<32x128xf32, #tpu.memory_space<vmem>>, vector<32x128xf32>
      %cst_36 = arith.constant dense<0.000000e+00> : vector<8x128xf32>
      %37 = tpu.matmul %33, %36, %cst_36 {dimension_numbers = #tpu.dot_dimension_numbers<[1], [0], [0], [1], [0, 0, 1, 1], [], []>} : vector<8x32xf32>, vector<32x128xf32>, vector<8x128xf32> -> vector<8x128xf32>
      %38 = vector.shape_cast %35 : vector<8x128xf32> to vector<1x8x128xf32>
      %c0_37 = arith.constant 0 : index
      %c0_38 = arith.constant 0 : index
      %c0_39 = arith.constant 0 : index
      %39 = vector.load %arg11[%c0_37, %c0_38, %c0_39] : memref<1x8x128xf32, #tpu.memory_space<vmem>>, vector<1x8x128xf32>
      tpu.vector_store %arg11[%c0_37, %c0_38, %c0_39], %38 {strides = array<i32>} : memref<1x8x128xf32, #tpu.memory_space<vmem>>, vector<1x8x128xf32>,
      %40 = vector.shape_cast %37 : vector<8x128xf32> to vector<1x8x128xf32>
      %c0_40 = arith.constant 0 : index
      %c0_41 = arith.constant 0 : index
      %c0_42 = arith.constant 0 : index
      %41 = vector.load %arg12[%c0_40, %c0_41, %c0_42] : memref<1x8x128xf32, #tpu.memory_space<vmem>>, vector<1x8x128xf32>
      tpu.vector_store %arg12[%c0_40, %c0_41, %c0_42], %40 {strides = array<i32>} : memref<1x8x128xf32, #tpu.memory_space<vmem>>, vector<1x8x128xf32>,
    } else {
    }
    %c0 = arith.constant 0 : index
    %c0_1 = arith.constant 0 : index
    %c0_2 = arith.constant 0 : index
    %3 = vector.load %arg2[%c0, %c0_1, %c0_2] : memref<1x8x32xf32, #tpu.memory_space<vmem>>, vector<1x8x32xf32>
    %4 = vector.shape_cast %3 : vector<1x8x32xf32> to vector<8x32xf32>
    %c0_3 = arith.constant 0 : index
    %c0_4 = arith.constant 0 : index
    %5 = vector.load %arg5[%c0_3, %c0_4] : memref<32x128xf32, #tpu.memory_space<vmem>>, vector<32x128xf32>
    %cst = arith.constant dense<0.000000e+00> : vector<8x128xf32>
    %6 = tpu.matmul %4, %5, %cst {dimension_numbers = #tpu.dot_dimension_numbers<[1], [0], [0], [1], [0, 0, 1, 1], [], []>} : vector<8x32xf32>, vector<32x128xf32>, vector<8x128xf32> -> vector<8x128xf32>
    %cst_5 = arith.constant 0.353553385 : f32
    %7 = vector.broadcast %cst_5 : f32 to vector<8x128xf32>
    %8 = arith.mulf %6, %7 : vector<8x128xf32>
    %9 = vector.shape_cast %8 : vector<8x128xf32> to vector<1x8x128xf32>
    %c0_6 = arith.constant 0 : index
    %c0_7 = arith.constant 0 : index
    %c0_8 = arith.constant 0 : index
    %10 = vector.load %arg11[%c0_6, %c0_7, %c0_8] : memref<1x8x128xf32, #tpu.memory_space<vmem>>, vector<1x8x128xf32>
    "tpu.trace_start"() <{level = 10 : i32, message = "btk,bsk->bts"}> : () -> ()
    %cst_9 = arith.constant dense<0.000000e+00> : vector<1x8x8xf32>
    %11 = tpu.matmul %9, %10, %cst_9 {dimension_numbers = #tpu.dot_dimension_numbers<[2], [2], [1], [1], [0, 0, 0, 1, 1, 1], [0], [0]>} : vector<1x8x128xf32>, vector<1x8x128xf32>, vector<1x8x8xf32> -> vector<1x8x8xf32>
    "tpu.trace_stop"() : () -> ()
    %cst_10 = arith.constant dense<0xFF800000> : vector<1x8xf32>
    %12 = vector.multi_reduction <maximumf>, %11, %cst_10 [2] : vector<1x8x8xf32> to vector<1x8xf32>
    %13 = vector.shape_cast %12 : vector<1x8xf32> to vector<1x8x1xf32>
    %14 = vector.broadcast %13 : vector<1x8x1xf32> to vector<1x8x8xf32>
    %15 = arith.subf %11, %14 : vector<1x8x8xf32>
    %16 = math.exp %15 : vector<1x8x8xf32>
    %cst_11 = arith.constant dense<0.000000e+00> : vector<1x8xf32>
    %17 = vector.multi_reduction <add>, %16, %cst_11 [2] : vector<1x8x8xf32> to vector<1x8xf32>
    %18 = vector.shape_cast %17 : vector<1x8xf32> to vector<1x8x1xf32>
    %19 = tpu.reciprocal %18 : vector<1x8x1xf32> -> vector<1x8x1xf32>
    %20 = vector.broadcast %19 : vector<1x8x1xf32> to vector<1x8x8xf32>
    %21 = arith.mulf %16, %20 : vector<1x8x8xf32>
    %c0_12 = arith.constant 0 : index
    %c0_13 = arith.constant 0 : index
    %c0_14 = arith.constant 0 : index
    %22 = vector.load %arg12[%c0_12, %c0_13, %c0_14] : memref<1x8x128xf32, #tpu.memory_space<vmem>>, vector<1x8x128xf32>
    "tpu.trace_start"() <{level = 10 : i32, message = "bts,bsk->btk"}> : () -> ()
    %cst_15 = arith.constant dense<0.000000e+00> : vector<1x8x128xf32>
    %23 = tpu.matmul %21, %22, %cst_15 {dimension_numbers = #tpu.dot_dimension_numbers<[2], [1], [1], [2], [0, 0, 0, 1, 1, 2], [0], [0]>} : vector<1x8x8xf32>, vector<1x8x128xf32>, vector<1x8x128xf32> -> vector<1x8x128xf32>
    "tpu.trace_stop"() : () -> ()
    %24 = vector.shape_cast %23 : vector<1x8x128xf32> to vector<8x128xf32>
    %c0_16 = arith.constant 0 : index
    %c0_17 = arith.constant 0 : index
    %25 = vector.load %arg8[%c0_16, %c0_17] : memref<128x32xf32, #tpu.memory_space<vmem>>, vector<128x32xf32>
    %cst_18 = arith.constant dense<0.000000e+00> : vector<8x32xf32>
    %26 = tpu.matmul %24, %25, %cst_18 {dimension_numbers = #tpu.dot_dimension_numbers<[1], [0], [0], [1], [0, 0, 1, 1], [], []>} : vector<8x128xf32>, vector<128x32xf32>, vector<8x32xf32> -> vector<8x32xf32>
    %27 = vector.shape_cast %26 : vector<8x32xf32> to vector<1x8x32xf32>
    %c0_19 = arith.constant 0 : index
    %c0_20 = arith.constant 0 : index
    %c0_21 = arith.constant 0 : index
    %28 = vector.load %arg9[%c0_19, %c0_20, %c0_21] : memref<1x8x32xf32, #tpu.memory_space<vmem>>, vector<1x8x32xf32>
    tpu.vector_store %arg9[%c0_19, %c0_20, %c0_21], %27 {strides = array<i32>} : memref<1x8x32xf32, #tpu.memory_space<vmem>>, vector<1x8x32xf32>,
    %c0_22 = arith.constant 0 : index
    %c0_23 = arith.constant 0 : index
    %c0_24 = arith.constant 0 : index
    %29 = vector.load %arg10[%c0_22, %c0_23, %c0_24] : memref<1x8x8xf32, #tpu.memory_space<vmem>>, vector<1x8x8xf32>
    tpu.vector_store %arg10[%c0_22, %c0_23, %c0_24], %21 {strides = array<i32>} : memref<1x8x8xf32, #tpu.memory_space<vmem>>, vector<1x8x8xf32>,
    return
  }
  func.func @transform_0(%arg0: i32, %arg1: i32) -> (i32, i32, i32) {
    %c0_i32 = arith.constant 0 : i32
    %c0_i32_0 = arith.constant 0 : i32
    return %arg0, %arg1, %c0_i32 : i32, i32, i32
  }
  func.func @transform_1(%arg0: i32, %arg1: i32) -> (i32, i32, i32) {
    %c0_i32 = arith.constant 0 : i32
    %c0_i32_0 = arith.constant 0 : i32
    %c0_i32_1 = arith.constant 0 : i32
    return %arg0, %c0_i32, %c0_i32_0 : i32, i32, i32
  }
  func.func @transform_2(%arg0: i32, %arg1: i32) -> (i32, i32, i32) {
    %c0_i32 = arith.constant 0 : i32
    %c0_i32_0 = arith.constant 0 : i32
    %c0_i32_1 = arith.constant 0 : i32
    return %arg0, %c0_i32, %c0_i32_0 : i32, i32, i32
  }
  func.func @transform_3(%arg0: i32, %arg1: i32) -> (i32, i32) {
    %c0_i32 = arith.constant 0 : i32
    %c0_i32_0 = arith.constant 0 : i32
    %c0_i32_1 = arith.constant 0 : i32
    return %c0_i32, %c0_i32_0 : i32, i32
  }
  func.func @transform_4(%arg0: i32, %arg1: i32) -> (i32, i32) {
    %c0_i32 = arith.constant 0 : i32
    %c0_i32_0 = arith.constant 0 : i32
    %c0_i32_1 = arith.constant 0 : i32
    return %c0_i32, %c0_i32_0 : i32, i32
  }
  func.func @transform_5(%arg0: i32, %arg1: i32) -> (i32, i32) {
    %c0_i32 = arith.constant 0 : i32
    %c0_i32_0 = arith.constant 0 : i32
    %c0_i32_1 = arith.constant 0 : i32
    return %c0_i32, %c0_i32_0 : i32, i32
  }
  func.func @transform_6(%arg0: i32, %arg1: i32) -> (i32, i32) {
    %c0_i32 = arith.constant 0 : i32
    %c0_i32_0 = arith.constant 0 : i32
    %c0_i32_1 = arith.constant 0 : i32
    return %c0_i32, %c0_i32_0 : i32, i32
  }
  func.func @transform_7(%arg0: i32, %arg1: i32) -> (i32, i32, i32) {
    %c0_i32 = arith.constant 0 : i32
    %c0_i32_0 = arith.constant 0 : i32
    return %arg0, %arg1, %c0_i32 : i32, i32, i32
  }
  func.func @transform_8(%arg0: i32, %arg1: i32) -> (i32, i32, i32) {
    %c0_i32 = arith.constant 0 : i32
    %c0_i32_0 = arith.constant 0 : i32
    return %arg0, %arg1, %c0_i32 : i32, i32, i32
  }
}

</mosaic_0001>

<bundles_post_ra>
// kernel: tpu_custom_call.1
= control target key start
LH: loop header
LB: loop body
LE: loop exit
PB: predicated region body
PF: predicated region fallthrough
CT: control target
= control target key end

     0   :  { %s1664_s0 = inlined_call_operand.vmem [shape: f32[2,8,32], index: 0, kind: input, shape index: {}]   ;;  %s1665_s1 = inlined_call_operand.vmem [shape: f32[2,8,32], index: 1, kind: input, shape index: {}]   ;;  %s1666_s2 = inlined_call_operand.vmem [shape: f32[2,8,32], index: 2, kind: input, shape index: {}]   ;;  %s1667_s3 = inlined_call_operand.vmem [shape: f32[32,128], index: 3, kind: input, shape index: {}]   ;;  %s1668_s4 = inlined_call_operand.vmem [shape: f32[32,128], index: 4, kind: input, shape index: {}]   ;;  %s1669_s5 = inlined_call_operand.vmem [shape: f32[32,128], index: 5, kind: input, shape index: {}]   ;;  %s1670_s6 = inlined_call_operand.vmem [shape: f32[128,32], index: 6, kind: input, shape index: {}]   ;;  %s1671_s7 = inlined_call_operand.hbm [shape: f32[2,8,32], index: 7, kind: output, shape index: {0}]   ;;  %s1672_s8 = inlined_call_operand.hbm [shape: f32[2,8,8], index: 8, kind: output, shape index: {1}]  }
   0x1   :  { %1675 = sst [smem:[#allocation10_spill]] %s1664_s0 }
   0x2   :  { %1676 = sst [smem:[#allocation11_spill]] %s1665_s1 }
   0x3   :  { %14 = vsyncpa [#allocation5], 0 }
   0x4   :  { %16 = vsyncpa [#allocation5 + $0x1], 0 }
   0x5   :  { %17 = vsyncpa [#allocation7], 0 }
   0x6   :  { %19 = vsyncpa [#allocation7 + $0x1], 0  ;;  %s1380_s27 = smov 0   ;;  %s1382_s28 = smov 0  }
   0x7   :  { %s1384_s29 = smov 0   ;;  %s1386_s30 = smov 0  }
   0x8   :  { %s1388_s9 = smov 0   ;;  %s1390_s10 = smov 0  }
   0x9 LB: > { %s1023_s11 = sadd.s32 4294967295, %s1329_s10   ;;  %s1024_s12 = sadd.s32 4294967294, %s1329_s10   ;;  %s1329_s10 = sphi %s1390_s10, %s25_s10   ;;  %s1325_s9 = sphi %s1388_s9, %s1687_s9   ;;  %s1321_s30 = sphi %s1386_s30, %s1686_s30   ;;  %s1317_s29 = sphi %s1384_s29, %s1685_s29   ;;  %s1313_s28 = sphi %s1382_s28, %s1684_s28   ;;  %s1309_s27 = sphi %s1380_s27, %s1683_s27  }
   0xa   : > { %s37_s13 = sadd.s32 1, %s1325_s9  ;;  %s210_s14 = sadd.s32 1, %s1317_s29 }
   0xb   : > { %p39_p0 = scmp.ge.s32.totalorder %s37_s13, 2  ;;  %p220_p1 = scmp.ne.s32.totalorder %s1317_s29, %s1313_s28 }
   0xc   : > { %p221_p2 = scmp.eq.s32.totalorder %s1023_s11, 1  ;;  %p226_p3 = scmp.ne.s32.totalorder %s1313_s28, %s1309_s27 }
   0xd   : > { %s1689_s13 = smov (%p39_p0, %s37_s13), 0  ;;  %p227_p5 = scmp.eq.s32.totalorder %s1024_s12, 1 }
   0xe   : > { %p1420_p4 = por %p221_p2, %p220_p1  ;;  %s205_s16 = ssub.s32 %s1325_s9, %s1689_s13 }
   0xf   : > { %p1027_p6 = scmp.ge.s32.totalorder %s1329_s10, 1  ;;  %p208_p7 = scmp.eq.s32.totalorder %s205_s16, 0 }
  0x10   : > { %p1427_p8 = por %p227_p5, %p226_p3  ;;  %p309_p9 = scmp.lt.s32.totalorder %s1329_s10, 3 }
  0x11   : > { %s1433_s18 = scalar_select %p208_p7, %s1317_s29, %s210_s14  }
  0x12   : > { %p310_p10 = pnand %p1027_p6, %p309_p9 }
  0x13   : > { %p358_p11 = scmp.lt.s32.totalorder (!%p310_p10), %s1321_s30, 1  ;;  %s1679_s1 = sld [smem:[#allocation11_spill]] (!%p310_p10) }
  0x14   : > { %313 = sbr.rel (%p310_p10) target bundleno = 1150 (0x47e), region = 48  ;;  %s1680_s0 = sld [smem:[#allocation10_spill]] (!%p310_p10) }
  0x15   : > { %s1580_s25 = sand.u32 (!%p310_p10), 1, %s1313_s28  }
  0x16   : > { %s1673_s11 = sshll.u32 (!%p310_p10), %s1580_s25, 3 }
  0x17   : > { %s357_s12 = scalar_lea.vmem (!%p310_p10), [#allocation6], %s1673_s11 }
  0x18   : > { %s895_s22 = sshll.u32 (!%p310_p10), %s357_s12, 4  ;;  %s896_s22 = int_to_ptr.vmem [resolvable:$true] %s895_s22 }
  0x19   : > { %v382_v0 = vld [vmem:[%s1668_s4 + $0x18] sm:$0xff]  ;;  %v1331_v1 = vmov 0.0   ;;  %v381_v2 = vld [vmem:[%s1668_s4 + $0x10] sm:$0xff]  ;;  %vm1332_vm0 = vmmov 0   ;;  %s359_s23 = scalar_select %p358_p11, %s1321_s30, 1  ;;  %v380_v3 = vld [vmem:[%s1668_s4 + $0x8] sm:$0xff] }
  0x1a   : > { %1079 = vmatprep.subr.mxu1 %v1331_v1  ;;  %1087 = vmatprep.mubr.msk.f32.mxu1 %vm1332_vm0, %v1331_v1  ;;  %v379_v4 = vld [vmem:[%s1668_s4] sm:$0xff]  ;;  %vm383_vm1 = vcmask 261120   ;;  %v460_v6 = vld [vmem:[%s1669_s5 + $0x18] sm:$0xff]  ;;  %v459_v7 = vld [vmem:[%s1669_s5 + $0x10] sm:$0xff]  ;;  %vm687_vm2 = vcmask 64512   ;;  %s1223_s24 = scalar_lea.vmem %s896_s22, 128 }
  0x1b   : > { %1080 = vmatpush3.msra.mxu1 %v382_v0  ;;  %1122 = vmatprep.subr.mxu0 %v1331_v1  ;;  %s1453_s26 = sshll.u32 %s359_s23, 3  ;;  %v458_v8 = vld [vmem:[%s1669_s5 + $0x8] sm:$0xff]  ;;  %v457_v9 = vld [vmem:[%s1669_s5] sm:$0xff]  ;;  %v540_v11 = vld [vmem:[%s1667_s3 + $0x18] sm:$0xff]  ;;  %s867_s23 = scalar_lea.sflag [#allocation7], %s1580_s25 }
  0x1c   : > { %1081 = vmatprep.subr.mxu1 %v1331_v1  ;;  %1154 = vmatprep.mubr.msk.f32.mxu0 %vm1332_vm0, %v1331_v1  ;;  %s368_s19 = scalar_lea.vmem %s1679_s1, %s1453_s26  ;;  %s372_s14 = scalar_lea.vmem %s1666_s2, %s1453_s26  ;;  %v539_v12 = vld [vmem:[%s1667_s3 + $0x10] sm:$0xff]  ;;  %v538_v13 = vld [vmem:[%s1667_s3 + $0x8] sm:$0xff]  ;;  %v537_v14 = vld [vmem:[%s1667_s3] sm:$0xff] }
  0x1d   : > { %1082 = vmatpush3.msra.mxu1 %v381_v2  ;;  %v377_v5 = vld [vmem:[%s368_s19] sm:$0xff]  ;;  %v788_v31 = vld [vmem:[%s1670_s6 + $0x78] sm:$0xff]  ;;  %v787_v32 = vld [vmem:[%s1670_s6 + $0x70] sm:$0xff]  ;;  %s1674_s19 = sshll.u32 %s1321_s30, 7  ;;  %p1224_p12 = scmp.ne.s32.totalorder %s896_s22, %s1223_s24 }
  0x1e   : > { %1083 = vmatprep.subr.mxu1 %v1331_v1  ;;  %v378_v10 = vld [vmem:[%s372_s14] sm:$0xff]  ;;  %s364_s14 = scalar_lea.vmem %s1680_s0, %s1453_s26  ;;  %1123 = vmatpush3.msra.mxu0 %v788_v31  ;;  %v786_v33 = vld [vmem:[%s1670_s6 + $0x68] sm:$0xff]  ;;  %v784_v35 = vld [vmem:[%s1670_s6 + $0x58] sm:$0xff]  ;;  %s893_s21 = scalar_lea.hbm %s1672_s8, %s1674_s19 }
  0x1f   : > { %1084 = vmatpush3.msra.mxu1 %v380_v3  ;;  %v536_v15 = vld [vmem:[%s364_s14] sm:$0xff]  ;;  %1124 = vmatprep.subr.mxu0 %v1331_v1  ;;  %v783_v36 = vld [vmem:[%s1670_s6 + $0x50] sm:$0xff]  ;;  %v782_v37 = vld [vmem:[%s1670_s6 + $0x48] sm:$0xff]  ;;  %p1225_p13 = pnand %p1224_p12, %p1420_p4  ;;  %s1333_s14 = smov [#allocation6]  }
  0x20   : > { %1085 = vmatprep.subr.mxu1 %v1331_v1  ;;  %1125 = vmatpush3.msra.mxu0 %v787_v32  ;;  %v785_v34 = vld [vmem:[%s1670_s6 + $0x60] sm:$0xff]  ;;  %v780_v39 = vld [vmem:[%s1670_s6 + $0x38] sm:$0xff]  ;;  %v779_v40 = vld [vmem:[%s1670_s6 + $0x30] sm:$0xff]  ;;  %s1227_s16 = sshll.u32 %s1333_s14, 4  ;;  %s1228_s16 = int_to_ptr.vmem [resolvable:$false] %s1227_s16 }
  0x21   : > { %1086 = vmatpush3.msra.mxu1 %v379_v4  ;;  %1126 = vmatprep.subr.mxu0 %v1331_v1  ;;  %v781_v38 = vld [vmem:[%s1670_s6 + $0x40] sm:$0xff]  ;;  %v778_v41 = vld [vmem:[%s1670_s6 + $0x28] sm:$0xff]  ;;  %v776_v43 = vld [vmem:[%s1670_s6 + $0x18] sm:$0xff]  ;;  %p1226_p0 = pneg %p1225_p13  ;;  %s1229_s11 = scalar_lea.vmem %s1228_s16, 256 }
  0x22   : > { %1088 = vmatmul.mubr.msk.f32.vlgmr.msra.gmra.mxu1 %vm383_vm1, %v377_v5  ;;  %1090 = vmatprep.subr.mxu1 %v1331_v1  ;;  %v777_v42 = vld [vmem:[%s1670_s6 + $0x20] sm:$0xff]  ;;  %v775_v44 = vld [vmem:[%s1670_s6 + $0x10] sm:$0xff]  ;;  %v774_v45 = vld [vmem:[%s1670_s6 + $0x8] sm:$0xff]  ;;  %p1230_p1 = scmp.lt.s32.totalorder %s896_s22, %s1228_s16  ;;  %p1231_p2 = scmp.lt.s32.totalorder %s1229_s11, %s1223_s24 }
  0x23   : > { %1091 = vmatpush3.msra.mxu1 %v460_v6  ;;  %1098 = vmatprep.mubr.msk.f32.mxu1 %vm1332_vm0, %v1331_v1  ;;  %v773_v49 = vld [vmem:[%s1670_s6] sm:$0xff] }
  0x24   : > { %1092 = vmatprep.subr.mxu1 %v1331_v1  ;;  %1127 = vmatpush3.msra.mxu0 %v786_v33  ;;  %p1232_p3 = por %p1231_p2, %p1230_p1 }
  0x25   : > { %1093 = vmatpush3.msra.mxu1 %v459_v7  ;;  %1128 = vmatprep.subr.mxu0 %v1331_v1 }
  0x26   : > { %1094 = vmatprep.subr.mxu1 %v1331_v1  ;;  %1129 = vmatpush3.msra.mxu0 %v785_v34  ;;  %p1233_p5 = pnand %p1232_p3, %p1226_p0 }
  0x27   : > { %1095 = vmatpush3.msra.mxu1 %v458_v8  ;;  %1130 = vmatprep.subr.mxu0 %v1331_v1 }
  0x28   : > { %1096 = vmatprep.subr.mxu1 %v1331_v1  ;;  %1131 = vmatpush3.msra.mxu0 %v784_v35 }
  0x29   : > { %1097 = vmatpush3.msra.mxu1 %v457_v9  ;;  %1132 = vmatprep.subr.mxu0 %v1331_v1 }
  0x2a   : > { %1099 = vmatmul.mubr.msk.f32.vlgmr.msra.gmra.mxu1 %vm383_vm1, %v378_v10  ;;  %1101 = vmatprep.subr.mxu1 %v1331_v1 }
  0x2b   : > { %1102 = vmatpush3.msra.mxu1 %v540_v11  ;;  %1109 = vmatprep.mubr.msk.f32.mxu1 %vm1332_vm0, %v1331_v1 }
  0x2c   : > { %1103 = vmatprep.subr.mxu1 %v1331_v1  ;;  %1133 = vmatpush3.msra.mxu0 %v783_v36 }
  0x2d   : > { %1104 = vmatpush3.msra.mxu1 %v539_v12  ;;  %1134 = vmatprep.subr.mxu0 %v1331_v1 }
  0x2e   : > { %1105 = vmatprep.subr.mxu1 %v1331_v1  ;;  %1135 = vmatpush3.msra.mxu0 %v782_v37 }
  0x2f   : > { %1106 = vmatpush3.msra.mxu1 %v538_v13  ;;  %1136 = vmatprep.subr.mxu0 %v1331_v1 }
  0x30   : > { %1107 = vmatprep.subr.mxu1 %v1331_v1  ;;  %1137 = vmatpush3.msra.mxu0 %v781_v38 }
  0x31   : > { %1108 = vmatpush3.msra.mxu1 %v537_v14  ;;  %1138 = vmatprep.subr.mxu0 %v1331_v1 }
  0x32   : > { %1110 = vmatmul.mubr.msk.f32.vlgmr.msra.gmra.mxu1 %vm383_vm1, %v536_v15  ;;  %1112 = vmatprep.subr.mxu1 %v1331_v1 }
  0x33   : > { %1114 = vmatprep.mubr.msk.f32.mxu1 %vm1332_vm0, %v1331_v1  ;;  %1139 = vmatpush3.msra.mxu0 %v780_v39 }
  0x34   : > { %1140 = vmatprep.subr.mxu0 %v1331_v1 }
  0x35   : > { %1141 = vmatpush3.msra.mxu0 %v779_v40 }
  0x36   : > { %1142 = vmatprep.subr.mxu0 %v1331_v1 }
  0x37   : > { %1143 = vmatpush3.msra.mxu0 %v778_v41 }
  0x38   : > { %1144 = vmatprep.subr.mxu0 %v1331_v1 }
  0x39   : > { %1145 = vmatpush3.msra.mxu0 %v777_v42 }
  0x3a   : > { %1146 = vmatprep.subr.mxu0 %v1331_v1 }
  0x3b   : > { %1147 = vmatpush3.msra.mxu0 %v776_v43 }
  0x3c   : > { %1148 = vmatprep.subr.mxu0 %v1331_v1 }
  0x3d   : > { %1149 = vmatpush3.msra.mxu0 %v775_v44 }
  0x3e   : > { %1150 = vmatprep.subr.mxu0 %v1331_v1 }
  0x3f   : > { %1151 = vmatpush3.msra.mxu0 %v774_v45 }
  0x40   : > { %1152 = vmatprep.subr.mxu0 %v1331_v1 }
  0x41   : > { %1153 = vmatpush3.msra.mxu0 %v773_v49 }
  0xe2   : > { %v453_v16 = vpop.f32.mrf.mxu1 }
  0xe3   : > { %1113 = vmatpush3.xpose.msra.mxu1 %v453_v16 }
  0xe4   : > { %v1089_v17 = vpop.f32.mrf.mxu1  ;;  %1117 = vmatprep.subr.mxu1 %v1331_v1 }
  0xea   : > { %v530_v18 = vpop.f32.mrf.mxu1 }
  0xec   : > { %v1100_v19 = vpop.f32.mrf.mxu1 }
  0xf2   : > { %v611_v20 = vpop.f32.mrf.mxu1 }
  0xf3   : > { %v615_v21 = vmul.f32 0.35355338, %v611_v20 }
  0xf4   : > { %v1111_v22 = vpop.f32.mrf.mxu1 }
  0xf5   : > { %1115 = vmatmul.mubr.f32.vlgmr.msra.gmra.mxu1 %v615_v21 }
  0xf6   : > { %1118 = vmatpush3.msra.mxu1 %v530_v18  ;;  %1119 = vmatprep.mubr.msk.f32.mxu1 %vm1332_vm0, %v1331_v1 }
 0x1b5   : > { %v683_v23 = vpop.f32.mrf.mxu1 }
 0x1b6   : > { %v688_v24 = vsel %vm687_vm2, %v683_v23, -inf }
 0x1b7   : > { %689 = vmax.xlane.f32.xlu0 %v688_v24  ;;  %v1116_v25 = vpop.f32.mrf.mxu1 }
 0x240   : > { %v690_v26 = vpop.xlane.xlu0 %689 }
 0x241   : > { %v691_v27 = vsub.f32 %v683_v23, %v690_v26 }
 0x243   : > { %v692_v28 = vmul.f32 1.442695, %v691_v27 }
 0x245   : > { %1219 = vpow2.f32 %v692_v28 }
 0x252   : > { %v1220_v29 = vpop.eup %1219 }
 0x253   : > { %v694_v30 = vsel %vm687_vm2, %v1220_v29, 0.0 }
 0x254   : > { %695 = vadd.xlane.f32.xlu0 %v694_v30 }
 0x2dd   : > { %v696_v46 = vpop.xlane.xlu0 %695 }
 0x2de   : > { %1221 = vrcp.f32 %v696_v46 }
 0x2eb   : > { %v1222_v47 = vpop.eup %1221 }
 0x2ec   : > { %v698_v48 = vmul.f32 %v1222_v47, %v1220_v29 }
 0x2ee   : > { %1120 = vmatmul.mubr.msk.f32.vlgmr.msra.gmra.mxu1 %vm687_vm2, %v698_v48  ;;  %860 = vst.msk [vmem:[%s357_s12] sm:$0xff] %vm687_vm2, %v698_v48 }
 0x3ae   : > { %v769_v50 = vpop.f32.mrf.mxu1 }
 0x3af   : > { %1155 = vmatmul.mubr.f32.vlgmr.msra.gmra.mxu0 %v769_v50 }
 0x3b0   : > { %v1121_v51 = vpop.f32.mrf.mxu1 }
 0x3b1   : > { %1236 = shalt.err (!%p1233_p5)
}
 0x3b2   : > { %s1237_s0 = scalar_lea.hbm %s893_s21, 128  ;;  %s1241_s20 = scalar_lea.hbm %s1672_s8, 256 }
 0x3b3   : > { %p1238_p6 = scmp.ne.s32.totalorder %s893_s21, %s1237_s0  ;;  %p1242_p10 = scmp.lt.s32.totalorder %s893_s21, %s1672_s8 }
 0x3b4   : > { %p1243_p11 = scmp.lt.s32.totalorder %s1241_s20, %s1237_s0 }
 0x3b5   : > { %p1239_p7 = pnand %p1238_p6, %p1420_p4 }
 0x3b6   : > { %p1244_p12 = por %p1243_p11, %p1242_p10 }
 0x3b7   : > { %p1240_p9 = pneg %p1239_p7 }
 0x3b9   : > { %p1245_p13 = pnand %p1244_p12, %p1240_p9 }
 0x3bb   : > { %1248 = shalt.err (!%p1245_p13)
}
 0x3bc   : > { %1158 = dma.vmem_to_hbm [thread:$0]  (%p1420_p4), %s896_s22, 128, %s893_s21, %s867_s23  }
 0x3bd   : > { %s1681_s11 = sshll.u32 %s1580_s25, 3  ;;  %s1682_s16 = sshll.u32 %s1321_s30, 7 }
 0x3be   : > { %s350_s24 = scalar_lea.vmem [#allocation4], %s1681_s11  ;;  %s1616_s1 = scalar_lea.hbm %s1671_s7, %s1682_s16 }
 0x3bf   : > { %s881_s14 = sshll.u32 %s350_s24, 4  ;;  %s862_s0 = scalar_lea.sflag [#allocation5], %s1580_s25  ;;  %s1618_s14 = int_to_ptr.vmem [resolvable:$true] %s881_s14 }
 0x3c0   : > { %s1249_s19 = scalar_lea.vmem %s1618_s14, 128  ;;  %s1334_s30 = smov [#allocation4]  }
 0x3c1   : > { %p1250_p0 = scmp.ne.s32.totalorder %s1618_s14, %s1249_s19  ;;  %s1253_s21 = sshll.u32 %s1334_s30, 4  ;;  %s1254_s21 = int_to_ptr.vmem [resolvable:$false] %s1253_s21 }
 0x3c2   : > { %s1255_s22 = scalar_lea.vmem %s1254_s21, 256  ;;  %p1256_p3 = scmp.lt.s32.totalorder %s1618_s14, %s1254_s21 }
 0x3c3   : > { %p1251_p1 = pnand %p1250_p0, %p1420_p4  ;;  %p1257_p5 = scmp.lt.s32.totalorder %s1255_s22, %s1249_s19 }
 0x3c5   : > { %p1252_p2 = pneg %p1251_p1  ;;  %p1258_p6 = por %p1257_p5, %p1256_p3 }
 0x3c7   : > { %p1259_p7 = pnand %p1258_p6, %p1252_p2 }
 0x46f   : > { %v855_v52 = vpop.f32.mrf.mxu0 }
 0x470   : > { %859 = vst.msk [vmem:[%s350_s24] sm:$0xff] %vm383_vm1, %v855_v52 }
 0x471   : > { %v1156_v53 = vpop.f32.mrf.mxu0 }
 0x472   : > { %1262 = shalt.err (!%p1259_p7)
}
 0x473   : > { %s1263_s23 = scalar_lea.hbm %s1616_s1, 128  ;;  %s1267_s11 = scalar_lea.hbm %s1671_s7, 256 }
 0x474   : > { %p1264_p9 = scmp.ne.s32.totalorder %s1616_s1, %s1263_s23  ;;  %p1268_p12 = scmp.lt.s32.totalorder %s1616_s1, %s1671_s7 }
 0x475   : > { %p1269_p13 = scmp.lt.s32.totalorder %s1267_s11, %s1263_s23 }
 0x476   : > { %p1265_p10 = pnand %p1264_p9, %p1420_p4 }
 0x477   : > { %p1270_p0 = por %p1269_p13, %p1268_p12 }
 0x478   : > { %p1266_p11 = pneg %p1265_p10 }
 0x47a   : > { %p1271_p1 = pnand %p1270_p0, %p1266_p11 }
 0x47c   : > { %1274 = shalt.err (!%p1271_p1)
}
 0x47d   : > { %1157 = dma.vmem_to_hbm [thread:$0]  (%p1420_p4), %s1618_s14, 128, %s1616_s1, %s862_s0  }
 0x47e PF: > { %p1168_p2 = scmp.ge.s32.totalorder %s1329_s10, 2  ;;  %s907_s12 = sand.u32 1, %s1309_s27  }
 0x47f   : > { %s908_s26 = scalar_lea.sflag [#allocation5], %s907_s12 }
 0x480   : > { %p1162_p3 = pnand %p1168_p2, %p1427_p8 }
 0x482   : > { %p1163_p5 = pneg %p1162_p3 }
 0x484   : > { %1300 = dma.done.wait (%p1163_p5), %s908_s26, 128  }
 0x485   : > { %1302 = vsyncadd (%p1163_p5), %s908_s26, 4294967168  ;;  %s917_s19 = scalar_lea.sflag [#allocation7], %s907_s12 }
 0x486   : > { %1304 = dma.done.wait (%p1163_p5), %s917_s19, 128  }
 0x487   : > { %1306 = vsyncadd (%p1163_p5), %s917_s19, 4294967168  ;;  %s25_s10 = sadd.s32 1, %s1329_s10   ;;  %s1683_s27 = smov %s1313_s28 }
 0x488   : > { %p22_p6 = scmp.ge.s32.totalorder %s25_s10, 4   ;;  %s1684_s28 = smov %s1317_s29 }
 0x489   : > { %s1685_s29 = smov %s1433_s18  ;;  %s1686_s30 = smov %s1325_s9 }
 0x48a   : > { %s1687_s9 = smov %s1689_s13  ;;  %24 = sbr.rel (!%p22_p6) target bundleno = 9 (0x9), region = 110 }
 0x48f   :  { %922 = vsyncpa [#allocation5], 1 }
 0x490   :  { %924 = vsyncpa [#allocation5 + $0x1], 1 }
 0x491   :  { %925 = vsyncpa [#allocation7], 1 }
 0x492   :  { %927 = vsyncpa [#allocation7 + $0x1], 1 }

</bundles_post_ra>
